<compile_context>
chip_gen: v6e
topology: v6e:2x2x1
jax: 0.10.0
libtpu: 0.0.40
codegen_flags: <defaults>
</compile_context>

<pallas_src>
import functools

import jax
import jax.numpy as jnp
from jax.experimental import pallas as pl
from jax.experimental.pallas import tpu as pltpu


def _catblock_kernel(x_ref, wd_ref, bd_ref, wu_ref, bu_ref, o_ref):
    # x_ref / o_ref: (TB, C, L) block. Weights use PyTorch nn.Linear layout:
    #   wd_ref: (H, C), bd_ref: (H, 1), wu_ref: (C, H), bu_ref: (C, 1)
    wd = wd_ref[...]
    bd = bd_ref[...]
    wu = wu_ref[...]
    bu = bu_ref[...]
    tb = x_ref.shape[0]

    def se_branch(p):  # p: (C, 1) pooled vector -> (C, 1) sigmoid gate
        h = jnp.dot(wd, p, preferred_element_type=jnp.float32) + bd   # (H, 1)
        h = jnp.maximum(h, 0.0)                                       # ReLU
        z = jnp.dot(wu, h, preferred_element_type=jnp.float32) + bu   # (C, 1)
        return jax.nn.sigmoid(z)

    # Static unroll over the (small, capped) batch tile; each iteration is an
    # independent reduce -> tiny-MXU -> gate chain, so they pipeline freely.
    for t in range(tb):
        xt = x_ref[t].astype(jnp.float32)                  # (C, L)
        avg = jnp.mean(xt, axis=-1, keepdims=True)         # (C, 1)
        mx = jnp.max(xt, axis=-1, keepdims=True)           # (C, 1)
        # (g_avg + g_max) * x + x  ==  (g_avg + g_max + 1) * x
        gate = se_branch(avg) + se_branch(mx) + 1.0        # (C, 1)
        o_ref[t] = (gate * xt).astype(o_ref.dtype)


def _choose_batch_tile(batch, channel, length, itemsize):
    """Batch elements per grid step: ~2 MiB x-block, >=8 grid steps when the
    batch allows, unroll capped at 16, and TB must divide batch evenly."""
    per_elem = max(1, channel * length * itemsize)
    tb_bytes = max(1, (2 << 20) // per_elem)   # keep the x block <= ~2 MiB
    tb_steps = max(1, batch // 8)              # keep the grid reasonably long
    tb = int(min(batch, tb_bytes, tb_steps, 16))
    while batch % tb:
        tb -= 1
    return max(tb, 1)


@functools.partial(jax.jit, static_argnames=("donate_x",))
def catblock(x, w_down, b_down, w_up, b_up, donate_x=False):
    """CATblock forward. x: (B, C, L); weights in PyTorch nn.Linear layout."""
    B, C, L = x.shape
    H = w_down.shape[0]
    wd = w_down.astype(jnp.float32)
    wu = w_up.astype(jnp.float32)
    bd = b_down.reshape(H, 1).astype(jnp.float32)
    bu = b_up.reshape(C, 1).astype(jnp.float32)

    itemsize = x.dtype.itemsize
    tb = _choose_batch_tile(B, C, L, itemsize)

    # VMEM budget: in + out x-blocks, each double-buffered, plus weights and
    # headroom; capped well below v7x's 64 MiB physical VMEM.
    block_bytes = tb * C * L * itemsize
    vmem_limit = int(min(max(4 * block_bytes + (2 << 20), 16 << 20), 48 << 20))

    cost = pl.CostEstimate(
        flops=2 * B * C * L + 8 * B * C * H,
        transcendentals=2 * B * C,
        bytes_accessed=2 * B * C * L * itemsize
        + 4 * (w_down.size + w_up.size + b_down.size + b_up.size),
    )

    # TODO(synk): for very long L, add a trailing "arbitrary" L grid axis with
    # sum/-inf-max VMEM scratch (pl.when init) and a second lane-dense gating
    # pass, so the per-step block stays bounded on v7x.
    return pl.pallas_call(
        _catblock_kernel,
        out_shape=jax.ShapeDtypeStruct((B, C, L), x.dtype),
        grid=(B // tb,),
        in_specs=[
            pl.BlockSpec((tb, C, L), lambda i: (i, 0, 0)),   # x
            pl.BlockSpec((H, C), lambda i: (0, 0)),          # downLinear.weight
            pl.BlockSpec((H, 1), lambda i: (0, 0)),          # downLinear.bias
            pl.BlockSpec((C, H), lambda i: (0, 0)),          # upLinear.weight
            pl.BlockSpec((C, 1), lambda i: (0, 0)),          # upLinear.bias
        ],
        out_specs=pl.BlockSpec((tb, C, L), lambda i: (i, 0, 0)),
        compiler_params=pltpu.CompilerParams(
            dimension_semantics=("parallel",),
            vmem_limit_bytes=vmem_limit,
        ),
        cost_estimate=cost,
        input_output_aliases={0: 0} if donate_x else {},
    )(x, wd, bd, wu, bu)


def _reference(x, w_down, b_down, w_up, b_up):
    """Pure-JAX mirror of the PyTorch forward."""
    avg = jnp.mean(x, axis=-1)                           # (B, C)
    mx = jnp.max(x, axis=-1)                             # (B, C)

    def mlp(v):
        h = jax.nn.relu(v @ w_down.T + b_down)
        return jax.nn.sigmoid(h @ w_up.T + b_up)

    gate = mlp(avg) + mlp(mx)                            # (B, C)
    return gate[..., None] * x + x


if __name__ == "__main__":
    batch, channel, length = 4, 32, 128
    c_para = 4
    hidden = channel // c_para                           # 8

    key = jax.random.PRNGKey(0)
    kx, kwd, kbd, kwu, kbu = jax.random.split(key, 5)

    x = jax.random.normal(kx, (batch, channel, length), dtype=jnp.float32)

    # PyTorch nn.Linear default init: U(-1/sqrt(fan_in), 1/sqrt(fan_in))
    s_d = 1.0 / (channel ** 0.5)
    s_u = 1.0 / (hidden ** 0.5)
    w_down = jax.random.uniform(kwd, (hidden, channel), jnp.float32, -s_d, s_d)
    b_down = jax.random.uniform(kbd, (hidden,), jnp.float32, -s_d, s_d)
    w_up = jax.random.uniform(kwu, (channel, hidden), jnp.float32, -s_u, s_u)
    b_up = jax.random.uniform(kbu, (channel,), jnp.float32, -s_u, s_u)

    out = jax.block_until_ready(catblock(x, w_down, b_down, w_up, b_up))
    ref = _reference(x, w_down, b_down, w_up, b_up)

    assert out.shape == (batch, channel, length)
    assert out.dtype == jnp.float32
    assert jnp.allclose(out, ref, atol=1e-5, rtol=1e-5), "mismatch vs reference"
    print("KERNEL_OK")
</pallas_src>

<mosaic_0001>
module attributes {stable_mosaic.version = 11 : i64} {
  func.func @_catblock_kernel(%arg0: i32, %arg1: memref<1x32x128xf32, #tpu.memory_space<vmem>>, %arg2: memref<8x32xf32, #tpu.memory_space<vmem>>, %arg3: memref<8x1xf32, #tpu.memory_space<vmem>>, %arg4: memref<32x8xf32, #tpu.memory_space<vmem>>, %arg5: memref<32x1xf32, #tpu.memory_space<vmem>>, %arg6: memref<1x32x128xf32, #tpu.memory_space<vmem>>) attributes {dimension_semantics = [#tpu.dimension_semantics<parallel>], iteration_bounds = array<i64: 4>, scalar_prefetch = 0 : i64, scratch_operands = 0 : i64, tpu.core_type = #tpu.core_type<tc>, window_params = [{transform_indices = @transform_0, window_bounds = array<i64: 1, 32, 128>}, {pipeline_mode = #tpu.pipeline_mode<synchronous>, transform_indices = @transform_1, window_bounds = array<i64: 8, 32>}, {pipeline_mode = #tpu.pipeline_mode<synchronous>, transform_indices = @transform_2, window_bounds = array<i64: 8, 1>}, {pipeline_mode = #tpu.pipeline_mode<synchronous>, transform_indices = @transform_3, window_bounds = array<i64: 32, 8>}, {pipeline_mode = #tpu.pipeline_mode<synchronous>, transform_indices = @transform_4, window_bounds = array<i64: 32, 1>}, {transform_indices = @transform_5, window_bounds = array<i64: 1, 32, 128>}]} {
    %c0 = arith.constant 0 : index
    %c0_0 = arith.constant 0 : index
    %0 = vector.load %arg2[%c0, %c0_0] : memref<8x32xf32, #tpu.memory_space<vmem>>, vector<8x32xf32>
    %c0_1 = arith.constant 0 : index
    %c0_2 = arith.constant 0 : index
    %1 = vector.load %arg3[%c0_1, %c0_2] : memref<8x1xf32, #tpu.memory_space<vmem>>, vector<8x1xf32>
    %c0_3 = arith.constant 0 : index
    %c0_4 = arith.constant 0 : index
    %2 = vector.load %arg4[%c0_3, %c0_4] : memref<32x8xf32, #tpu.memory_space<vmem>>, vector<32x8xf32>
    %c0_5 = arith.constant 0 : index
    %c0_6 = arith.constant 0 : index
    %3 = vector.load %arg5[%c0_5, %c0_6] : memref<32x1xf32, #tpu.memory_space<vmem>>, vector<32x1xf32>
    %c0_7 = arith.constant 0 : index
    %c0_8 = arith.constant 0 : index
    %c0_9 = arith.constant 0 : index
    %4 = vector.load %arg1[%c0_7, %c0_8, %c0_9] : memref<1x32x128xf32, #tpu.memory_space<vmem>>, vector<1x32x128xf32>
    %5 = vector.shape_cast %4 : vector<1x32x128xf32> to vector<32x128xf32>
    %cst = arith.constant dense<0.000000e+00> : vector<32xf32>
    %6 = vector.multi_reduction <add>, %5, %cst [1] : vector<32x128xf32> to vector<32xf32>
    %7 = vector.shape_cast %6 : vector<32xf32> to vector<32x1xf32>
    %cst_10 = arith.constant 1.280000e+02 : f32
    %8 = vector.broadcast %cst_10 : f32 to vector<32x1xf32>
    %9 = arith.divf %7, %8 : vector<32x1xf32>
    %cst_11 = arith.constant dense<0xFF800000> : vector<32xf32>
    %10 = vector.multi_reduction <maximumf>, %5, %cst_11 [1] : vector<32x128xf32> to vector<32xf32>
    %11 = vector.shape_cast %10 : vector<32xf32> to vector<32x1xf32>
    %cst_12 = arith.constant dense<0.000000e+00> : vector<8x1xf32>
    %12 = tpu.matmul %0, %9, %cst_12 {dimension_numbers = #tpu.dot_dimension_numbers<[1], [0], [0], [1], [0, 0, 1, 1], [], []>} : vector<8x32xf32>, vector<32x1xf32>, vector<8x1xf32> -> vector<8x1xf32>
    %13 = arith.addf %12, %1 : vector<8x1xf32>
    %cst_13 = arith.constant 0.000000e+00 : f32
    %14 = vector.broadcast %cst_13 : f32 to vector<8x1xf32>
    %15 = arith.maximumf %13, %14 : vector<8x1xf32>
    %cst_14 = arith.constant dense<0.000000e+00> : vector<32x1xf32>
    %16 = tpu.matmul %2, %15, %cst_14 {dimension_numbers = #tpu.dot_dimension_numbers<[1], [0], [0], [1], [0, 0, 1, 1], [], []>} : vector<32x8xf32>, vector<8x1xf32>, vector<32x1xf32> -> vector<32x1xf32>
    %17 = arith.addf %16, %3 : vector<32x1xf32>
    %18 = arith.negf %17 : vector<32x1xf32>
    %19 = math.exp %18 : vector<32x1xf32>
    %cst_15 = arith.constant 1.000000e+00 : f32
    %20 = vector.broadcast %cst_15 : f32 to vector<32x1xf32>
    %21 = arith.addf %20, %19 : vector<32x1xf32>
    %22 = arith.divf %20, %21 : vector<32x1xf32>
    %cst_16 = arith.constant dense<0.000000e+00> : vector<8x1xf32>
    %23 = tpu.matmul %0, %11, %cst_16 {dimension_numbers = #tpu.dot_dimension_numbers<[1], [0], [0], [1], [0, 0, 1, 1], [], []>} : vector<8x32xf32>, vector<32x1xf32>, vector<8x1xf32> -> vector<8x1xf32>
    %24 = arith.addf %23, %1 : vector<8x1xf32>
    %cst_17 = arith.constant 0.000000e+00 : f32
    %25 = vector.broadcast %cst_17 : f32 to vector<8x1xf32>
    %26 = arith.maximumf %24, %25 : vector<8x1xf32>
    %cst_18 = arith.constant dense<0.000000e+00> : vector<32x1xf32>
    %27 = tpu.matmul %2, %26, %cst_18 {dimension_numbers = #tpu.dot_dimension_numbers<[1], [0], [0], [1], [0, 0, 1, 1], [], []>} : vector<32x8xf32>, vector<8x1xf32>, vector<32x1xf32> -> vector<32x1xf32>
    %28 = arith.addf %27, %3 : vector<32x1xf32>
    %29 = arith.negf %28 : vector<32x1xf32>
    %30 = math.exp %29 : vector<32x1xf32>
    %cst_19 = arith.constant 1.000000e+00 : f32
    %31 = vector.broadcast %cst_19 : f32 to vector<32x1xf32>
    %32 = arith.addf %31, %30 : vector<32x1xf32>
    %33 = arith.divf %31, %32 : vector<32x1xf32>
    %34 = arith.addf %22, %33 : vector<32x1xf32>
    %cst_20 = arith.constant 1.000000e+00 : f32
    %35 = vector.broadcast %cst_20 : f32 to vector<32x1xf32>
    %36 = arith.addf %34, %35 : vector<32x1xf32>
    %37 = vector.broadcast %36 : vector<32x1xf32> to vector<32x128xf32>
    %38 = arith.mulf %37, %5 : vector<32x128xf32>
    %c0_21 = arith.constant 0 : index
    %c0_22 = arith.constant 0 : index
    %c0_23 = arith.constant 0 : index
    %39 = vector.load %arg6[%c0_21, %c0_22, %c0_23] : memref<1x32x128xf32, #tpu.memory_space<vmem>>, vector<1x32x128xf32>
    %40 = vector.shape_cast %39 : vector<1x32x128xf32> to vector<32x128xf32>
    %41 = vector.shape_cast %38 : vector<32x128xf32> to vector<1x32x128xf32>
    tpu.vector_store %arg6[%c0_21, %c0_22, %c0_23], %41 {strides = array<i32>} : memref<1x32x128xf32, #tpu.memory_space<vmem>>, vector<1x32x128xf32>,
    return
  }
  func.func @transform_0(%arg0: i32) -> (i32, i32, i32) {
    %c0_i32 = arith.constant 0 : i32
    %c0_i32_0 = arith.constant 0 : i32
    %c0_i32_1 = arith.constant 0 : i32
    return %arg0, %c0_i32, %c0_i32_0 : i32, i32, i32
  }
  func.func @transform_1(%arg0: i32) -> (i32, i32) {
    %c0_i32 = arith.constant 0 : i32
    %c0_i32_0 = arith.constant 0 : i32
    %c0_i32_1 = arith.constant 0 : i32
    return %c0_i32, %c0_i32_0 : i32, i32
  }
  func.func @transform_2(%arg0: i32) -> (i32, i32) {
    %c0_i32 = arith.constant 0 : i32
    %c0_i32_0 = arith.constant 0 : i32
    %c0_i32_1 = arith.constant 0 : i32
    return %c0_i32, %c0_i32_0 : i32, i32
  }
  func.func @transform_3(%arg0: i32) -> (i32, i32) {
    %c0_i32 = arith.constant 0 : i32
    %c0_i32_0 = arith.constant 0 : i32
    %c0_i32_1 = arith.constant 0 : i32
    return %c0_i32, %c0_i32_0 : i32, i32
  }
  func.func @transform_4(%arg0: i32) -> (i32, i32) {
    %c0_i32 = arith.constant 0 : i32
    %c0_i32_0 = arith.constant 0 : i32
    %c0_i32_1 = arith.constant 0 : i32
    return %c0_i32, %c0_i32_0 : i32, i32
  }
  func.func @transform_5(%arg0: i32) -> (i32, i32, i32) {
    %c0_i32 = arith.constant 0 : i32
    %c0_i32_0 = arith.constant 0 : i32
    %c0_i32_1 = arith.constant 0 : i32
    return %arg0, %c0_i32, %c0_i32_0 : i32, i32, i32
  }
}

</mosaic_0001>

<bundles_post_ra>
// kernel: catblock.1
= control target key start
LH: loop header
LB: loop body
LE: loop exit
PB: predicated region body
PF: predicated region fallthrough
CT: control target
= control target key end

     0   :  { %10 = vsyncpa [#allocation3], 0  ;;  %s1310_s0 = inlined_call_operand.hbm [shape: f32[4,32,128], index: 0, kind: input, shape index: {}]   ;;  %s1311_s1 = inlined_call_operand.vmem [shape: f32[8,32], index: 1, kind: input, shape index: {}]   ;;  %s1312_s2 = inlined_call_operand.vmem [shape: f32[8,1], index: 2, kind: input, shape index: {}]   ;;  %s1313_s3 = inlined_call_operand.vmem [shape: f32[32,8], index: 3, kind: input, shape index: {}]   ;;  %s1314_s4 = inlined_call_operand.vmem [shape: f32[32,1], index: 4, kind: input, shape index: {}]   ;;  %s1315_s5 = inlined_call_operand.hbm [shape: f32[4,32,128], index: 5, kind: output, shape index: {}]  }
   0x1   :  { %12 = vsyncpa [#allocation3 + $0x1], 0 }
   0x2   :  { %13 = vsyncpa [#allocation4], 0 }
   0x3   :  { %15 = vsyncpa [#allocation4 + $0x1], 0  ;;  %s1092_s18 = smov 0   ;;  %s1094_s19 = smov 0  }
   0x4   :  { %s1096_s20 = smov 0   ;;  %s1098_s21 = smov 0  }
   0x5 LB: > { %s1113_s22 = sadd.s32 4294967295, %s1051_s21   ;;  %s778_s23 = sadd.s32 4294967294, %s1051_s21   ;;  %s1051_s21 = sphi %s1098_s21, %s1329_s21   ;;  %s1047_s20 = sphi %s1096_s20, %s1328_s20   ;;  %s1043_s19 = sphi %s1094_s19, %s1327_s19   ;;  %s1039_s18 = sphi %s1092_s18, %s1326_s18  }
   0x6   : > { %s1117_s24 = sadd.s32 1, %s1051_s21   ;;  %s28_s25 = sadd.s32 1, %s1047_s20 }
   0x7   : > { %s25_s26 = ssub.s32 %s1051_s21, %s1117_s24  ;;  %p35_p0 = scmp.ne.s32.totalorder %s1047_s20, %s1043_s19 }
   0x8   : > { %p26_p1 = scmp.eq.s32.totalorder %s25_s26, 0  ;;  %p36_p2 = scmp.eq.s32.totalorder %s1051_s21, 0 }
   0x9   : > { %p41_p3 = scmp.ne.s32.totalorder %s1043_s19, %s1039_s18  ;;  %p42_p4 = scmp.eq.s32.totalorder %s1113_s22, 0 }
   0xa   : > { %s1129_s27 = scalar_select %p26_p1, %s1047_s20, %s28_s25  }
   0xb   : > { %p1131_p5 = por %p36_p2, %p35_p0  ;;  %p1135_p6 = por %p42_p4, %p41_p3 }
   0xc   : > { %p149_p7 = scmp.eq.s32.totalorder %s1113_s22, 3  ;;  %p155_p8 = scmp.eq.s32.totalorder %s778_s23, 3 }
   0xd   : > { %s1319_s29 = scalar_select %p1135_p6, 1, 0 }
   0xe   : > { %p884_p9 = scmp.lt.s32.totalorder %s1051_s21, 4  ;;  %p1141_p10 = por %p149_p7, %p35_p0 }
   0xf   : > { %p1145_p11 = por %p155_p8, %p41_p3  ;;  %s187_s7 = sand.u32 1, %s1047_s20  }
  0x10   : > { %s1320_s30 = scalar_select %p1141_p10, 1, 0 }
  0x11   : > { %s1321_s6 = scalar_select %p1145_p11, 1, 0 }
  0x12   : > { %s810_s8 = sshll.u32 %s1051_s21, 9  ;;  %s781_s9 = sshll.u32 %s187_s7, 5 }
  0x13   : > { %s1154_s12 = scalar_lea.hbm %s1310_s0, %s810_s8  ;;  %s191_s13 = scalar_lea.vmem [#allocation2], %s781_s9 }
  0x14   : > { %s198_s14 = sshll.u32 %s191_s13, 4  ;;  %p1158_p12 = pnand %p884_p9, %p1131_p5  ;;  %s1162_s14 = int_to_ptr.vmem [resolvable:$true] %s198_s14 }
  0x15   : > { %s1164_s16 = scalar_lea.sflag [#allocation3], %s187_s7  ;;  %s959_s17 = scalar_lea.hbm %s1154_s12, 512 }
  0x16   : > { %p960_p13 = scmp.ne.s32.totalorder %s1154_s12, %s959_s17  ;;  %p961_p0 = pneg %p1158_p12 }
  0x17   : > { %s964_s26 = scalar_lea.hbm %s1310_s0, 2048  ;;  %p965_p3 = scmp.lt.s32.totalorder %s1154_s12, %s1310_s0 }
  0x18   : > { %p962_p1 = pnand %p961_p0, %p960_p13  ;;  %p966_p4 = scmp.lt.s32.totalorder %s964_s26, %s959_s17 }
  0x1a   : > { %p963_p2 = pneg %p962_p1  ;;  %p967_p5 = por %p966_p4, %p965_p3 }
  0x1c   : > { %p968_p7 = pnand %p967_p5, %p963_p2 }
  0x1e   : > { %971 = shalt.err (!%p968_p7)
}
  0x1f   : > { %s972_s7 = scalar_lea.vmem %s1162_s14, 512  ;;  %s1053_s9 = smov [#allocation2]  }
  0x20   : > { %p973_p8 = scmp.ne.s32.totalorder %s1162_s14, %s972_s7  ;;  %s977_s10 = sshll.u32 %s1053_s9, 4  ;;  %s978_s10 = int_to_ptr.vmem [resolvable:$false] %s977_s10 }
  0x21   : > { %s979_s11 = scalar_lea.vmem %s978_s10, 1024  ;;  %p980_p1 = scmp.lt.s32.totalorder %s1162_s14, %s978_s10 }
  0x22   : > { %p975_p9 = pnand %p973_p8, %p961_p0  ;;  %p981_p11 = scmp.lt.s32.totalorder %s979_s11, %s972_s7 }
  0x24   : > { %p976_p13 = pneg %p975_p9  ;;  %p982_p10 = por %p981_p11, %p980_p1 }
  0x26   : > { %p983_p6 = pnand %p982_p10, %p976_p13 }
  0x28   : > { %986 = shalt.err (!%p983_p6)
}
  0x29   : > { %s1054_s13 = smov 128   ;;  %s1055_s17 = smov 8  }
  0x2a   : > { %879 = dma.hbm_to_vmem [thread:$0]  (!%p1158_p12), %s1154_s12, 512, %s1162_s14, %s1164_s16, %s1054_s13, %s1054_s13, %s1055_s17  }
  0x2b   : > { %p784_p0 = scmp.ge.s32.totalorder %s1051_s21, 1  ;;  %p206_p2 = scmp.lt.s32.totalorder %s1051_s21, 5 }
  0x2d   : > { %p207_p3 = pnand %p784_p0, %p206_p2 }
  0x2e   : > { %s1188_s23 = sand.u32 (!%p207_p3), 1, %s1043_s19   ;;  %p1323_p6 = scmp.ne.s32.totalorder (!%p207_p3), %s1319_s29, 0 }
  0x2f   : > { %210 = sbr.rel (%p207_p3) target bundleno = 988 (0x3dc), region = 40  ;;  %s785_s25 = sshll.u32 (!%p207_p3), %s1188_s23, 5 }
  0x30   : > { %s213_s26 = scalar_lea.sflag (!%p207_p3), [#allocation3], %s1188_s23  ;;  %s216_s28 = scalar_lea.vmem (!%p207_p3), [#allocation2], %s785_s25 }
  0x34   : > { %1030 = dma.done.wait (%p1323_p6), %s213_s26, 512  }
  0x35   : > { %1032 = vsyncadd (%p1323_p6), %s213_s26, 4294966784  ;;  %v1198_v0 = vld [vmem:[%s216_s28 + $0x18] sm:$0xff]  ;;  %v1200_v1 = vld [vmem:[%s216_s28 + $0x8] sm:$0xff]  ;;  %v1056_v4 = vmov 0.0   ;;  %vm1057_vm0 = vmmov 0   ;;  %vm278_vm1 = vcmask 261120  }
  0x36   : > { %263 = vadd.xlane.f32.xlu0 %v1198_v0  ;;  %259 = vadd.xlane.f32.xlu1 %v1200_v1  ;;  %v1204_v2 = vld [vmem:[%s216_s28 + $0x10] sm:$0xff]  ;;  %v1206_v3 = vld [vmem:[%s216_s28] sm:$0xff]  ;;  %vm353_vm2 = vcmask 64512   ;;  %v246_v21 = vld [vmem:[%s1313_s3 + $0x8] sm:$0xff]  ;;  %v1058_v35 = vmov 0   ;;  %s242_s7 = scalar_lea.vmem [#allocation5], %s785_s25 }
  0x37   : > { %832 = vmatprep.subr.mxu0 %v1056_v4  ;;  %840 = vmatprep.mubr.msk.f32.mxu0 %vm1057_vm0, %v1056_v4  ;;  %v243_v13 = vld [vmem:[%s1311_s1] sm:$0xff]  ;;  %v247_v23 = vld [vmem:[%s1313_s3 + $0x10] sm:$0xff]  ;;  %v248_v24 = vld [vmem:[%s1313_s3 + $0x18] sm:$0xff]  ;;  %s705_s9 = sshll.u32 %s242_s7, 4  ;;  %s811_s10 = sshll.u32 %s1113_s22, 9  ;;  %s1262_s9 = int_to_ptr.vmem [resolvable:$true] %s705_s9 }
  0x38   : > { %v245_v14 = vld [vmem:[%s1313_s3] sm:$0xff]  ;;  %926 = vset.pattern.permute.xlu1 %v1058_v35  ;;  %925 = vset.pattern.permute.xlu0 %v1058_v35  ;;  %v250_v36 = vld [vmem:[%s1314_s4 + $0x8] sm:$0xff]  ;;  %v251_v39 = vld [vmem:[%s1314_s4 + $0x10] sm:$0xff]  ;;  %s1267_s25 = scalar_lea.hbm %s1315_s5, %s811_s10  ;;  %s692_s17 = scalar_lea.sflag [#allocation4], %s1188_s23 }
  0x39   : > { %845 = vmatprep.mubr.msk.f32.mxu1 %vm353_vm2, %v245_v14  ;;  %v244_v15 = vld [vmem:[%s1312_s2] sm:$0xff]  ;;  %v252_v41 = vld [vmem:[%s1314_s4 + $0x18] sm:$0xff]  ;;  %s987_s26 = scalar_lea.vmem %s1262_s9, 512  ;;  %p1324_p11 = scmp.ne.s32.totalorder %s1320_s30, 0 }
  0x3a   : > { %261 = vadd.xlane.f32.xlu0 %v1204_v2  ;;  %257 = vadd.xlane.f32.xlu1 %v1206_v3  ;;  %v249_v37 = vld [vmem:[%s1314_s4] sm:$0xff]  ;;  %p988_p10 = scmp.ne.s32.totalorder %s1262_s9, %s987_s26  ;;  %s1059_s22 = smov [#allocation5]  }
  0x3b   : > { %s991_s28 = sshll.u32 %s1059_s22, 4  ;;  %s992_s28 = int_to_ptr.vmem [resolvable:$false] %s991_s28 }
  0x3c   : > { %p989_p12 = pnand %p988_p10, %p1324_p11  ;;  %s993_s29 = scalar_lea.vmem %s992_s28, 1024 }
  0x3d   : > { %p994_p5 = scmp.lt.s32.totalorder %s1262_s9, %s992_s28  ;;  %p995_p7 = scmp.lt.s32.totalorder %s993_s29, %s987_s26 }
  0x3e   : > { %276 = vmax.xlane.f32.xlu0 %v1198_v0  ;;  %274 = vmax.xlane.f32.xlu1 %v1204_v2  ;;  %p990_p4 = pneg %p989_p12 }
  0x3f   : > { %p996_p8 = por %p995_p7, %p994_p5 }
  0x41   : > { %p997_p9 = pnand %p996_p8, %p990_p4 }
  0x42   : > { %272 = vmax.xlane.f32.xlu0 %v1200_v1  ;;  %270 = vmax.xlane.f32.xlu1 %v1206_v3 }
  0xbf   : > { %v264_v5 = vpop.xlane.xlu0 %263  ;;  %v260_v6 = vpop.xlane.xlu1 %259 }
  0xc0   : > { %v269_v7 = vmul.f32 0.0078125, %v264_v5  ;;  %v267_v11 = vmul.f32 0.0078125, %v260_v6 }
  0xc2   : > { %833 = vmatpush3.msra.mxu0 %v269_v7 }
  0xc3   : > { %v262_v8 = vpop.xlane.xlu0 %261  ;;  %834 = vmatprep.subr.mxu0 %v1056_v4  ;;  %v258_v9 = vpop.xlane.xlu1 %257 }
  0xc4   : > { %v268_v10 = vmul.f32 0.0078125, %v262_v8  ;;  %v266_v12 = vmul.f32 0.0078125, %v258_v9 }
  0xc6   : > { %835 = vmatpush3.msra.mxu0 %v268_v10 }
  0xc7   : > { %836 = vmatprep.subr.mxu0 %v1056_v4  ;;  %v277_v20 = vpop.xlane.xlu0 %276  ;;  %v275_v22 = vpop.xlane.xlu1 %274 }
  0xc8   : > { %837 = vmatpush3.msra.mxu0 %v267_v11 }
  0xc9   : > { %838 = vmatprep.subr.mxu0 %v1056_v4 }
  0xca   : > { %839 = vmatpush3.msra.mxu0 %v266_v12 }
  0xcb   : > { %841 = vmatmul.mubr.msk.f32.vlgmr.msra.gmra.mxu0 %vm278_vm1, %v243_v13  ;;  %v273_v25 = vpop.xlane.xlu0 %272  ;;  %v271_v26 = vpop.xlane.xlu1 %270 }
  0xcc   : > { %864 = vmatprep.mubr.msk.f32.mxu0 %vm353_vm2, %v245_v14 }
 0x18b   : > { %v348_v16 = vpop.f32.mrf.mxu0 }
 0x18c   : > { %v349_v17 = vadd.f32 %v348_v16, %v244_v15 }
 0x18d   : > { %v842_v18 = vpop.f32.mrf.mxu0 }
 0x18e   : > { %v352_v19 = vmax.f32 %v349_v17, 0.0 }
 0x190   : > { %843 = vmatprep.subr.mxu1 %v352_v19 }
 0x191   : > { %844 = vmatpush3.msra.mxu1 %v352_v19 }
 0x192   : > { %846 = vmatmul.mubr.msk.f32.vlgmr.msra.gmra.mxu1 %vm353_vm2, %v246_v21  ;;  %851 = vmatprep.subr.mxu1 %v1056_v4 }
 0x193   : > { %852 = vmatpush3.msra.mxu1 %v277_v20  ;;  %848 = vmatprep.mubr.msk.f32.mxu1 %vm353_vm2, %v247_v23 }
 0x194   : > { %853 = vmatprep.subr.mxu1 %v1056_v4 }
 0x195   : > { %854 = vmatpush3.msra.mxu1 %v275_v22 }
 0x196   : > { %849 = vmatmul.mubr.msk.f32.gmra.mxu1 %vm353_vm2, %v248_v24  ;;  %855 = vmatprep.subr.mxu1 %v1056_v4 }
 0x197   : > { %856 = vmatpush3.msra.mxu1 %v273_v25  ;;  %859 = vmatprep.mubr.msk.f32.mxu1 %vm1057_vm0, %v1056_v4 }
 0x198   : > { %857 = vmatprep.subr.mxu1 %v1056_v4 }
 0x199   : > { %858 = vmatpush3.msra.mxu1 %v271_v26 }
 0x19a   : > { %860 = vmatmul.mubr.msk.f32.vlgmr.msra.gmra.mxu1 %vm278_vm1, %v243_v13 }
 0x19b   : > { %867 = vmatprep.mubr.msk.f32.mxu1 %vm353_vm2, %v247_v23 }
 0x252   : > { %v847_v27 = vpop.f32.mrf.mxu1 }
 0x253   : > { %v438_v38 = vadd.f32 %v847_v27, %v250_v36 }
 0x254   : > { %v432_v28 = vpop.f32.mrf.mxu1 }
 0x255   : > { %v433_v40 = vadd.f32 %v432_v28, %v249_v37  ;;  %v793_v43 = vmul.f32 -1.442695, %v438_v38 }
 0x256   : > { %v850_v29 = vpop.f32.mrf.mxu1 }
 0x257   : > { %v792_v44 = vmul.f32 -1.442695, %v433_v40  ;;  %v448_v45 = vadd.f32 %v850_v29, %v252_v41  ;;  %927 = vpow2.f32 %v793_v43 }
 0x258   : > { %v442_v30 = vpop.f32.mrf.mxu1 }
 0x259   : > { %v443_v42 = vadd.f32 %v442_v30, %v251_v39  ;;  %929 = vpow2.f32 %v792_v44  ;;  %v795_v47 = vmul.f32 -1.442695, %v448_v45 }
 0x25a   : > { %v541_v31 = vpop.f32.mrf.mxu1 }
 0x25b   : > { %v542_v32 = vadd.f32 %v541_v31, %v244_v15  ;;  %v794_v46 = vmul.f32 -1.442695, %v443_v42 }
 0x25c   : > { %v861_v33 = vpop.f32.mrf.mxu1 }
 0x25d   : > { %v545_v34 = vmax.f32 %v542_v32, 0.0  ;;  %931 = vpow2.f32 %v794_v46 }
 0x25e   : > { %933 = vpow2.f32 %v795_v47 }
 0x25f   : > { %862 = vmatprep.subr.mxu0 %v545_v34  ;;  %870 = vmatprep.subr.mxu1 %v545_v34 }
 0x260   : > { %863 = vmatpush3.msra.mxu0 %v545_v34  ;;  %871 = vmatpush3.msra.mxu1 %v545_v34 }
 0x261   : > { %865 = vmatmul.mubr.msk.f32.vlgmr.msra.gmra.mxu0 %vm353_vm2, %v246_v21  ;;  %868 = vmatmul.mubr.msk.f32.vlgmr.msra.gmra.mxu1 %vm353_vm2, %v248_v24 }
 0x264   : > { %v928_v60 = vpop.eup %927 }
 0x265   : > { %v464_v63 = vadd.f32 1.0, %v928_v60 }
 0x266   : > { %v930_v61 = vpop.eup %929 }
 0x267   : > { %v463_v4 = vadd.f32 1.0, %v930_v61 }
 0x26a   : > { %v932_v62 = vpop.eup %931 }
 0x26b   : > { %v934_v5 = vpop.eup %933  ;;  %v465_v7 = vadd.f32 1.0, %v932_v62 }
 0x26c   : > { %v466_v15 = vadd.f32 1.0, %v934_v5 }
 0x321   : > { %v866_v48 = vpop.f32.mrf.mxu0  ;;  %v869_v49 = vpop.f32.mrf.mxu1 }
 0x322   : > { %v618_v50 = vadd.f32 %v866_v48, %v250_v36  ;;  %v628_v51 = vadd.f32 %v869_v49, %v252_v41 }
 0x323   : > { %v612_v52 = vpop.f32.mrf.mxu0  ;;  %v622_v53 = vpop.f32.mrf.mxu1 }
 0x324   : > { %v802_v54 = vmul.f32 -1.442695, %v618_v50  ;;  %v804_v55 = vmul.f32 -1.442695, %v628_v51  ;;  %v613_v56 = vadd.f32 %v612_v52, %v249_v37  ;;  %v623_v57 = vadd.f32 %v622_v53, %v251_v39 }
 0x326   : > { %935 = vpow2.f32 %v802_v54  ;;  %v801_v58 = vmul.f32 -1.442695, %v613_v56  ;;  %v803_v59 = vmul.f32 -1.442695, %v623_v57 }
 0x327   : > { %937 = vpow2.f32 %v804_v55 }
 0x328   : > { %939 = vpow2.f32 %v801_v58 }
 0x329   : > { %941 = vpow2.f32 %v803_v59 }
 0x32a   : > { %943 = vrcp.f32 %v464_v63 }
 0x32b   : > { %945 = vrcp.f32 %v463_v4 }
 0x333   : > { %v936_v6 = vpop.eup %935 }
 0x334   : > { %v938_v8 = vpop.eup %937  ;;  %v644_v9 = vadd.f32 1.0, %v936_v6 }
 0x335   : > { %v940_v10 = vpop.eup %939  ;;  %v646_v12 = vadd.f32 1.0, %v938_v8 }
 0x336   : > { %v942_v11 = vpop.eup %941  ;;  %947 = vrcp.f32 %v644_v9  ;;  %v643_v13 = vadd.f32 1.0, %v940_v10 }
 0x337   : > { %949 = vrcp.f32 %v465_v7  ;;  %v645_v14 = vadd.f32 1.0, %v942_v11  ;;  %v944_v16 = vpop.eup %943 }
 0x338   : > { %951 = vrcp.f32 %v643_v13  ;;  %v946_v17 = vpop.eup %945 }
 0x339   : > { %953 = vrcp.f32 %v645_v14 }
 0x33a   : > { %955 = vrcp.f32 %v646_v12 }
 0x33b   : > { %957 = vrcp.f32 %v466_v15 }
 0x343   : > { %v948_v18 = vpop.eup %947 }
 0x344   : > { %v950_v19 = vpop.eup %949  ;;  %v656_v20 = vadd.f32 %v948_v18, %v944_v16 }
 0x345   : > { %v952_v21 = vpop.eup %951 }
 0x346   : > { %v954_v22 = vpop.eup %953  ;;  %v660_v23 = vadd.f32 1.0, %v656_v20  ;;  %v655_v24 = vadd.f32 %v952_v21, %v946_v17 }
 0x347   : > { %v956_v25 = vpop.eup %955  ;;  %v657_v26 = vadd.f32 %v954_v22, %v950_v19 }
 0x348   : > { %670 = vperm.xlu1 %926, %v660_v23   ;;  %v659_v27 = vadd.f32 1.0, %v655_v24  ;;  %v958_v28 = vpop.eup %957 }
 0x349   : > { %v661_v29 = vadd.f32 1.0, %v657_v26  ;;  %v658_v30 = vadd.f32 %v958_v28, %v956_v25 }
 0x34a   : > { %665 = vperm.xlu0 %925, %v659_v27  }
 0x34b   : > { %v662_v31 = vadd.f32 1.0, %v658_v30 }
 0x34c   : > { %675 = vperm.xlu1 %926, %v661_v29  }
 0x350   : > { %680 = vperm.xlu1 %926, %v662_v31  }
 0x3c3   : > { %v671_v32 = vpop.permute.xlu1 %670 }
 0x3c4   : > { %v684_v33 = vmul.f32 %v671_v32, %v1200_v1 }
 0x3c5   : > { %v666_v34 = vpop.permute.xlu0 %665 }
 0x3c6   : > { %688 = vst [vmem:[%s242_s7 + $0x8] sm:$0xff] %v684_v33  ;;  %v683_v35 = vmul.f32 %v666_v34, %v1206_v3 }
 0x3c7   : > { %v676_v36 = vpop.permute.xlu1 %675 }
 0x3c8   : > { %687 = vst [vmem:[%s242_s7] sm:$0xff] %v683_v35  ;;  %v685_v37 = vmul.f32 %v676_v36, %v1204_v2 }
 0x3ca   : > { %689 = vst [vmem:[%s242_s7 + $0x10] sm:$0xff] %v685_v37 }
 0x3cb   : > { %v681_v1 = vpop.permute.xlu1 %680 }
 0x3cc   : > { %v686_v3 = vmul.f32 %v681_v1, %v1198_v0 }
 0x3ce   : > { %690 = vst [vmem:[%s242_s7 + $0x18] sm:$0xff] %v686_v3 }
 0x3cf   : > { %1000 = shalt.err (!%p997_p9)
}
 0x3d0   : > { %s1001_s12 = scalar_lea.hbm %s1267_s25, 512  ;;  %s1005_s16 = scalar_lea.hbm %s1315_s5, 2048 }
 0x3d1   : > { %p1002_p13 = scmp.ne.s32.totalorder %s1267_s25, %s1001_s12  ;;  %p1006_p2 = scmp.lt.s32.totalorder %s1267_s25, %s1315_s5 }
 0x3d2   : > { %p1007_p3 = scmp.lt.s32.totalorder %s1005_s16, %s1001_s12 }
 0x3d3   : > { %p1003_p1 = pnand %p1002_p13, %p1324_p11 }
 0x3d4   : > { %p1008_p6 = por %p1007_p3, %p1006_p2 }
 0x3d5   : > { %p1004_p0 = pneg %p1003_p1 }
 0x3d7   : > { %p1009_p10 = pnand %p1008_p6, %p1004_p0 }
 0x3d9   : > { %1012 = shalt.err (!%p1009_p10)
}
 0x3da   : > { %s1060_s10 = smov 128   ;;  %s1061_s11 = smov 8  }
 0x3db   : > { %874 = dma.vmem_to_hbm [thread:$0]  (%p1324_p11), %s1262_s9, 512, %s1267_s25, %s692_s17, %s1060_s10, %s1060_s10, %s1061_s11  }
 0x3dc PF: > { %p885_p12 = scmp.ge.s32.totalorder %s1051_s21, 2  ;;  %s720_s13 = sand.u32 1, %s1039_s18  }
 0x3dd   : > { %p1325_p4 = scmp.ne.s32.totalorder %s1321_s6, 0  ;;  %s721_s26 = scalar_lea.sflag [#allocation4], %s720_s13 }
 0x3df   : > { %p881_p5 = pnand %p885_p12, %p1325_p4 }
 0x3e1   : > { %p882_p7 = pneg %p881_p5 }
 0x3e3   : > { %1034 = dma.done.wait (%p882_p7), %s721_s26, 512  }
 0x3e4   : > { %1036 = vsyncadd (%p882_p7), %s721_s26, 4294966784  ;;  %p18_p8 = scmp.ge.s32.totalorder %s1117_s24, 6   ;;  %s1326_s18 = smov %s1043_s19 }
 0x3e5   : > { %s1327_s19 = smov %s1047_s20  ;;  %s1328_s20 = smov %s1129_s27 }
 0x3e6   : > { %s1329_s21 = smov %s1117_s24  ;;  %20 = sbr.rel (!%p18_p8) target bundleno = 5 (0x5), region = 85 }
 0x3eb   :  { %726 = vsyncpa [#allocation3], 1 }
 0x3ec   :  { %728 = vsyncpa [#allocation3 + $0x1], 1 }
 0x3ed   :  { %729 = vsyncpa [#allocation4], 1 }
 0x3ee   :  { %731 = vsyncpa [#allocation4 + $0x1], 1 }

</bundles_post_ra>
